<compile_context>
chip_gen: v6e
topology: v6e:2x2x1
jax: 0.10.0
libtpu: 0.0.40
codegen_flags: <defaults>
</compile_context>

<pallas_src>
import functools

import jax
import jax.numpy as jnp
from jax.experimental import pallas as pl
from jax.experimental.pallas import tpu as pltpu


def _tile(n, pref):
    """Largest tile <= pref that divides n and is a multiple of 8 (else full n)."""
    if n <= pref:
        return n
    for t in range(pref, 0, -8):
        if n % t == 0:
            return t
    return n


# ---------------------------------------------------------------------------
# Kernel 1: LayerNorm + fused QKV projection over flattened (B*S) row tiles.
# ---------------------------------------------------------------------------
def _ln_qkv_kernel(x_ref, gamma_ref, beta_ref, wqkv_ref, bqkv_ref,
                   q_ref, k_ref, v_ref, *, hid_dim, inv_scale):
    x = x_ref[...]                       # (Tr, H) f32
    gamma = gamma_ref[...]               # (1, H)  f32
    beta = beta_ref[...]                 # (1, H)  f32

    mu = jnp.mean(x, axis=-1, keepdims=True)
    var = jnp.mean((x - mu) * (x - mu), axis=-1, keepdims=True)
    y = ((x - mu) * jax.lax.rsqrt(var + 1e-5) * gamma + beta).astype(jnp.bfloat16)

    # One fused (Tr, H) @ (H, 3H) matmul on the MXU, f32 accumulate.
    qkv = jnp.dot(y, wqkv_ref[...], preferred_element_type=jnp.float32) \
        + bqkv_ref[...]                  # (Tr, 3H) f32

    H = hid_dim
    q_ref[...] = (qkv[:, :H] * inv_scale).astype(jnp.bfloat16)   # scale folded into Q
    k_ref[...] = qkv[:, H:2 * H].astype(jnp.bfloat16)
    v_ref[...] = qkv[:, 2 * H:].astype(jnp.bfloat16)


# ---------------------------------------------------------------------------
# Kernel 2: flash attention (online softmax over kv tiles) + output projection
#           + residual 1 + LayerNorm + row-tiled FFN + residual 2.
# ---------------------------------------------------------------------------
def _attn_ffn_kernel(x_ref, q_ref, k_ref, v_ref, gamma_ref, beta_ref,
                     wo_ref, bo_ref, w1_ref, b1_ref, w2_ref, b2_ref,
                     out_ref, acc_ref, m_ref, l_ref, *, n_heads):
    ki = pl.program_id(2)
    nkv = pl.num_programs(2)

    @pl.when(ki == 0)
    def _init():
        m_ref[...] = jnp.full_like(m_ref, -jnp.inf)
        l_ref[...] = jnp.zeros_like(l_ref)
        acc_ref[...] = jnp.zeros_like(acc_ref)

    q = q_ref[0]                          # (Tq, H) bf16, already scaled by 1/sqrt(hd)
    k = k_ref[0]                          # (Tk, H) bf16
    v = v_ref[0]                          # (Tk, H) bf16
    _, H = q.shape
    hd = H // n_heads

    # Static per-head loop with last-dim slices: no physical head transposes.
    for h in range(n_heads):
        sl = slice(h * hd, (h + 1) * hd)
        s = jax.lax.dot_general(q[:, sl], k[:, sl],
                                (((1,), (1,)), ((), ())),
                                preferred_element_type=jnp.float32)   # (Tq, Tk)
        m_prev = m_ref[h]                                             # (Tq, 1)
        m_new = jnp.maximum(m_prev, jnp.max(s, axis=-1, keepdims=True))
        alpha = jnp.exp(m_prev - m_new)
        p = jnp.exp(s - m_new)                                        # (Tq, Tk) f32
        l_ref[h] = alpha * l_ref[h] + jnp.sum(p, axis=-1, keepdims=True)
        acc_ref[:, sl] = alpha * acc_ref[:, sl] + jnp.dot(
            p.astype(jnp.bfloat16), v[:, sl], preferred_element_type=jnp.float32)
        m_ref[h] = m_new

    @pl.when(ki == nkv - 1)
    def _finalize():
        gamma = gamma_ref[...]            # (1, H)
        beta = beta_ref[...]              # (1, H)

        # Normalize the accumulated context per head (EUP reciprocal).
        for h in range(n_heads):
            sl = slice(h * hd, (h + 1) * hd)
            acc_ref[:, sl] = acc_ref[:, sl] * pl.reciprocal(l_ref[h], approx=True)
        ctx = acc_ref[...].astype(jnp.bfloat16)                       # (Tq, H)

        attn_out = jnp.dot(ctx, wo_ref[...],
                           preferred_element_type=jnp.float32) + bo_ref[...]
        src1 = x_ref[0] + attn_out                                    # residual 1 (f32)

        # Position-wise feed-forward on this row tile (pre-norm, shared gamma/beta).
        mu = jnp.mean(src1, axis=-1, keepdims=True)
        var = jnp.mean((src1 - mu) * (src1 - mu), axis=-1, keepdims=True)
        y2 = ((src1 - mu) * jax.lax.rsqrt(var + 1e-5) * gamma + beta
              ).astype(jnp.bfloat16)
        h1 = jnp.maximum(
            jnp.dot(y2, w1_ref[...], preferred_element_type=jnp.float32)
            + b1_ref[...], 0.0)
        ffn = jnp.dot(h1.astype(jnp.bfloat16), w2_ref[...],
                      preferred_element_type=jnp.float32) + b2_ref[...]

        out_ref[0] = src1 + ffn                                       # residual 2


# ---------------------------------------------------------------------------
# Wrapper
# ---------------------------------------------------------------------------
def encoder_layer(src, params, *, n_heads):
    B, S, H = src.shape
    P = params['w1'].shape[1]
    hd = H // n_heads
    inv_scale = 1.0 / (float(hd) ** 0.5)      # PyTorch impl: energy / sqrt(head_dim)

    # bf16 weights for the MXU; biases / LN params stay f32 (f32 accumulate + add).
    wqkv = jnp.concatenate(
        [params['wq'], params['wk'], params['wv']], axis=1).astype(jnp.bfloat16)
    bqkv = jnp.concatenate(
        [params['bq'], params['bk'], params['bv']], axis=1).astype(jnp.float32)
    gamma = params['gamma'].astype(jnp.float32)
    beta = params['beta'].astype(jnp.float32)
    wo = params['wo'].astype(jnp.bfloat16)
    bo = params['bo'].astype(jnp.float32)
    w1 = params['w1'].astype(jnp.bfloat16)
    b1 = params['b1'].astype(jnp.float32)
    w2 = params['w2'].astype(jnp.bfloat16)
    b2 = params['b2'].astype(jnp.float32)

    # Resident (single-copy, non-pipelined) VMEM operands.
    resident = pl.BlockSpec(memory_space=pltpu.MemorySpace.VMEM)

    # ---- Kernel 1: LayerNorm + fused QKV projection over B*S rows ----
    R = B * S
    Tr = _tile(R, 512)
    x2d = src.reshape(R, H)
    row_spec = pl.BlockSpec((Tr, H), lambda r: (r, 0))

    qkv_kernel = functools.partial(_ln_qkv_kernel, hid_dim=H, inv_scale=inv_scale)
    q2d, k2d, v2d = pl.pallas_call(
        qkv_kernel,
        out_shape=[jax.ShapeDtypeStruct((R, H), jnp.bfloat16)] * 3,
        grid_spec=pltpu.PrefetchScalarGridSpec(
            num_scalar_prefetch=0,
            grid=(R // Tr,),
            in_specs=[row_spec, resident, resident, resident, resident],
            out_specs=[row_spec, row_spec, row_spec],
        ),
        compiler_params=pltpu.CompilerParams(
            dimension_semantics=("parallel",),
            vmem_limit_bytes=32 * 1024 * 1024),
    )(x2d, gamma, beta, wqkv, bqkv)

    q = q2d.reshape(B, S, H)
    k = k2d.reshape(B, S, H)
    v = v2d.reshape(B, S, H)

    # ---- Kernel 2: flash attention + out-proj + residual + row-tiled FFN ----
    Tq = _tile(S, 256)
    Tk = _tile(S, 256)

    q_block = pl.BlockSpec((1, Tq, H), lambda b, qi, ki: (b, qi, 0))
    kv_block = pl.BlockSpec((1, Tk, H), lambda b, qi, ki: (b, ki, 0))

    attn_kernel = functools.partial(_attn_ffn_kernel, n_heads=n_heads)
    out = pl.pallas_call(
        attn_kernel,
        out_shape=jax.ShapeDtypeStruct((B, S, H), jnp.float32),
        grid_spec=pltpu.PrefetchScalarGridSpec(
            num_scalar_prefetch=0,
            grid=(B, S // Tq, S // Tk),
            in_specs=[q_block,               # src (residual 1)
                      q_block,               # q (scaled, bf16)
                      kv_block,              # k
                      kv_block,              # v
                      resident, resident,    # gamma, beta
                      resident, resident,    # Wo, bo
                      resident, resident,    # W1, b1
                      resident, resident],   # W2, b2
            out_specs=q_block,
            scratch_shapes=[
                pltpu.VMEM((Tq, H), jnp.float32),            # acc (context)
                pltpu.VMEM((n_heads, Tq, 1), jnp.float32),   # running max m
                pltpu.VMEM((n_heads, Tq, 1), jnp.float32),   # running sum l
            ],
        ),
        compiler_params=pltpu.CompilerParams(
            dimension_semantics=("parallel", "parallel", "arbitrary"),
            vmem_limit_bytes=32 * 1024 * 1024),
    )(src, q, k, v, gamma, beta, wo, bo, w1, b1, w2, b2)
    return out


# ---------------------------------------------------------------------------
# Plain-JAX reference (f32, for correctness check only)
# ---------------------------------------------------------------------------
def encoder_layer_ref(src, params, *, n_heads):
    B, S, H = src.shape
    hd = H // n_heads
    gamma, beta = params['gamma'][0], params['beta'][0]

    def ln(v):
        mu = jnp.mean(v, axis=-1, keepdims=True)
        var = jnp.mean((v - mu) ** 2, axis=-1, keepdims=True)
        return (v - mu) / jnp.sqrt(var + 1e-5) * gamma + beta

    y = ln(src)
    q = y @ params['wq'] + params['bq'][0]
    k = y @ params['wk'] + params['bk'][0]
    v = y @ params['wv'] + params['bv'][0]
    qh = q.reshape(B, S, n_heads, hd).transpose(0, 2, 1, 3)
    kh = k.reshape(B, S, n_heads, hd).transpose(0, 2, 1, 3)
    vh = v.reshape(B, S, n_heads, hd).transpose(0, 2, 1, 3)
    energy = jnp.einsum('bhqd,bhkd->bhqk', qh, kh) / jnp.sqrt(jnp.float32(hd))
    attn = jax.nn.softmax(energy, axis=-1)
    ctx = jnp.einsum('bhqk,bhkd->bhqd', attn, vh)
    ctx = ctx.transpose(0, 2, 1, 3).reshape(B, S, H)
    src1 = src + (ctx @ params['wo'] + params['bo'][0])
    y2 = ln(src1)
    ffn = jnp.maximum(y2 @ params['w1'] + params['b1'][0], 0.0) @ params['w2'] \
        + params['b2'][0]
    return src1 + ffn


if __name__ == "__main__":
    B, S, H, NH, PF = 2, 8, 32, 4, 64

    key = jax.random.PRNGKey(0)
    keys = jax.random.split(key, 16)

    def lin(kw, shape, scale=0.1):
        return (scale * jax.random.normal(kw, shape)).astype(jnp.float32)

    params = {
        'gamma': jnp.ones((1, H), jnp.float32),
        'beta': jnp.zeros((1, H), jnp.float32),
        'wq': lin(keys[0], (H, H)), 'bq': lin(keys[1], (1, H)),
        'wk': lin(keys[2], (H, H)), 'bk': lin(keys[3], (1, H)),
        'wv': lin(keys[4], (H, H)), 'bv': lin(keys[5], (1, H)),
        'wo': lin(keys[6], (H, H)), 'bo': lin(keys[7], (1, H)),
        'w1': lin(keys[8], (H, PF)), 'b1': lin(keys[9], (1, PF)),
        'w2': lin(keys[10], (PF, H)), 'b2': lin(keys[11], (1, H)),
    }

    src = jax.random.normal(keys[12], (B, S, H), dtype=jnp.float32)

    out = encoder_layer(src, params, n_heads=NH)
    out = jax.block_until_ready(out)

    ref = encoder_layer_ref(src, params, n_heads=NH)
    assert out.shape == (B, S, H)
    # bf16 MXU matmuls + approx softmax reciprocal -> relaxed tolerance vs f32 ref.
    assert jnp.allclose(out, ref, atol=3e-2, rtol=3e-2), \
        f"max abs diff {jnp.max(jnp.abs(out - ref))}"

    print("KERNEL_OK")
</pallas_src>

<mosaic_0001>
module attributes {stable_mosaic.version = 11 : i64} {
  func.func @_ln_qkv_kernel(%arg0: i32, %arg1: memref<16x32xf32, #tpu.memory_space<vmem>>, %arg2: memref<1x32xf32, #tpu.memory_space<vmem>>, %arg3: memref<1x32xf32, #tpu.memory_space<vmem>>, %arg4: memref<32x96xbf16, #tpu.memory_space<vmem>>, %arg5: memref<1x96xf32, #tpu.memory_space<vmem>>, %arg6: memref<16x32xbf16, #tpu.memory_space<vmem>>, %arg7: memref<16x32xbf16, #tpu.memory_space<vmem>>, %arg8: memref<16x32xbf16, #tpu.memory_space<vmem>>) attributes {dimension_semantics = [#tpu.dimension_semantics<parallel>], iteration_bounds = array<i64: 1>, scalar_prefetch = 0 : i64, scratch_operands = 0 : i64, tpu.core_type = #tpu.core_type<tc>, window_params = [{transform_indices = @transform_0, window_bounds = array<i64: 16, 32>}, {pipeline_mode = #tpu.pipeline_mode<synchronous>, transform_indices = @transform_1, window_bounds = array<i64: 1, 32>}, {pipeline_mode = #tpu.pipeline_mode<synchronous>, transform_indices = @transform_2, window_bounds = array<i64: 1, 32>}, {pipeline_mode = #tpu.pipeline_mode<synchronous>, transform_indices = @transform_3, window_bounds = array<i64: 32, 96>}, {pipeline_mode = #tpu.pipeline_mode<synchronous>, transform_indices = @transform_4, window_bounds = array<i64: 1, 96>}, {transform_indices = @transform_5, window_bounds = array<i64: 16, 32>}, {transform_indices = @transform_6, window_bounds = array<i64: 16, 32>}, {transform_indices = @transform_7, window_bounds = array<i64: 16, 32>}]} {
    %c0 = arith.constant 0 : index
    %c0_0 = arith.constant 0 : index
    %0 = vector.load %arg1[%c0, %c0_0] : memref<16x32xf32, #tpu.memory_space<vmem>>, vector<16x32xf32>
    %c0_1 = arith.constant 0 : index
    %c0_2 = arith.constant 0 : index
    %1 = vector.load %arg2[%c0_1, %c0_2] : memref<1x32xf32, #tpu.memory_space<vmem>>, vector<1x32xf32>
    %c0_3 = arith.constant 0 : index
    %c0_4 = arith.constant 0 : index
    %2 = vector.load %arg3[%c0_3, %c0_4] : memref<1x32xf32, #tpu.memory_space<vmem>>, vector<1x32xf32>
    %cst = arith.constant dense<0.000000e+00> : vector<16xf32>
    %3 = vector.multi_reduction <add>, %0, %cst [1] : vector<16x32xf32> to vector<16xf32>
    %4 = vector.shape_cast %3 : vector<16xf32> to vector<16x1xf32>
    %cst_5 = arith.constant 3.200000e+01 : f32
    %5 = vector.broadcast %cst_5 : f32 to vector<16x1xf32>
    %6 = arith.divf %4, %5 : vector<16x1xf32>
    %7 = vector.broadcast %6 : vector<16x1xf32> to vector<16x32xf32>
    %8 = arith.subf %0, %7 : vector<16x32xf32>
    %9 = vector.broadcast %6 : vector<16x1xf32> to vector<16x32xf32>
    %10 = arith.subf %0, %9 : vector<16x32xf32>
    %11 = arith.mulf %8, %10 : vector<16x32xf32>
    %cst_6 = arith.constant dense<0.000000e+00> : vector<16xf32>
    %12 = vector.multi_reduction <add>, %11, %cst_6 [1] : vector<16x32xf32> to vector<16xf32>
    %13 = vector.shape_cast %12 : vector<16xf32> to vector<16x1xf32>
    %cst_7 = arith.constant 3.200000e+01 : f32
    %14 = vector.broadcast %cst_7 : f32 to vector<16x1xf32>
    %15 = arith.divf %13, %14 : vector<16x1xf32>
    %16 = vector.broadcast %6 : vector<16x1xf32> to vector<16x32xf32>
    %17 = arith.subf %0, %16 : vector<16x32xf32>
    %cst_8 = arith.constant 9.99999974E-6 : f32
    %18 = vector.broadcast %cst_8 : f32 to vector<16x1xf32>
    %19 = arith.addf %15, %18 : vector<16x1xf32>
    %20 = math.rsqrt %19 : vector<16x1xf32>
    %21 = vector.broadcast %20 : vector<16x1xf32> to vector<16x32xf32>
    %22 = arith.mulf %17, %21 : vector<16x32xf32>
    %23 = vector.broadcast %1 : vector<1x32xf32> to vector<16x32xf32>
    %24 = arith.mulf %22, %23 : vector<16x32xf32>
    %25 = vector.broadcast %2 : vector<1x32xf32> to vector<16x32xf32>
    %26 = arith.addf %24, %25 : vector<16x32xf32>
    %27 = arith.truncf %26 : vector<16x32xf32> to vector<16x32xbf16>
    %c0_9 = arith.constant 0 : index
    %c0_10 = arith.constant 0 : index
    %28 = vector.load %arg4[%c0_9, %c0_10] : memref<32x96xbf16, #tpu.memory_space<vmem>>, vector<32x96xbf16>
    %cst_11 = arith.constant dense<0.000000e+00> : vector<16x96xf32>
    %29 = tpu.matmul %27, %28, %cst_11 {dimension_numbers = #tpu.dot_dimension_numbers<[1], [0], [0], [1], [0, 0, 1, 1], [], []>} : vector<16x32xbf16>, vector<32x96xbf16>, vector<16x96xf32> -> vector<16x96xf32>
    %c0_12 = arith.constant 0 : index
    %c0_13 = arith.constant 0 : index
    %30 = vector.load %arg5[%c0_12, %c0_13] : memref<1x96xf32, #tpu.memory_space<vmem>>, vector<1x96xf32>
    %31 = vector.broadcast %30 : vector<1x96xf32> to vector<16x96xf32>
    %32 = arith.addf %29, %31 : vector<16x96xf32>
    %33 = vector.extract_strided_slice %32 {offsets = [0, 0], sizes = [16, 32], strides = [1, 1]} : vector<16x96xf32> to vector<16x32xf32>
    %cst_14 = arith.constant 0.353553385 : f32
    %34 = vector.broadcast %cst_14 : f32 to vector<16x32xf32>
    %35 = arith.mulf %33, %34 : vector<16x32xf32>
    %36 = arith.truncf %35 : vector<16x32xf32> to vector<16x32xbf16>
    %c0_15 = arith.constant 0 : index
    %c0_16 = arith.constant 0 : index
    %37 = vector.load %arg6[%c0_15, %c0_16] : memref<16x32xbf16, #tpu.memory_space<vmem>>, vector<16x32xbf16>
    tpu.vector_store %arg6[%c0_15, %c0_16], %36 {strides = array<i32>} : memref<16x32xbf16, #tpu.memory_space<vmem>>, vector<16x32xbf16>,
    %38 = vector.extract_strided_slice %32 {offsets = [0, 32], sizes = [16, 32], strides = [1, 1]} : vector<16x96xf32> to vector<16x32xf32>
    %39 = arith.truncf %38 : vector<16x32xf32> to vector<16x32xbf16>
    %c0_17 = arith.constant 0 : index
    %c0_18 = arith.constant 0 : index
    %40 = vector.load %arg7[%c0_17, %c0_18] : memref<16x32xbf16, #tpu.memory_space<vmem>>, vector<16x32xbf16>
    tpu.vector_store %arg7[%c0_17, %c0_18], %39 {strides = array<i32>} : memref<16x32xbf16, #tpu.memory_space<vmem>>, vector<16x32xbf16>,
    %41 = vector.extract_strided_slice %32 {offsets = [0, 64], sizes = [16, 32], strides = [1, 1]} : vector<16x96xf32> to vector<16x32xf32>
    %42 = arith.truncf %41 : vector<16x32xf32> to vector<16x32xbf16>
    %c0_19 = arith.constant 0 : index
    %c0_20 = arith.constant 0 : index
    %43 = vector.load %arg8[%c0_19, %c0_20] : memref<16x32xbf16, #tpu.memory_space<vmem>>, vector<16x32xbf16>
    tpu.vector_store %arg8[%c0_19, %c0_20], %42 {strides = array<i32>} : memref<16x32xbf16, #tpu.memory_space<vmem>>, vector<16x32xbf16>,
    return
  }
  func.func @transform_0(%arg0: i32) -> (i32, i32) {
    %c0_i32 = arith.constant 0 : i32
    %c0_i32_0 = arith.constant 0 : i32
    return %arg0, %c0_i32 : i32, i32
  }
  func.func @transform_1(%arg0: i32) -> (i32, i32) {
    %c0_i32 = arith.constant 0 : i32
    %c0_i32_0 = arith.constant 0 : i32
    %c0_i32_1 = arith.constant 0 : i32
    return %c0_i32, %c0_i32_0 : i32, i32
  }
  func.func @transform_2(%arg0: i32) -> (i32, i32) {
    %c0_i32 = arith.constant 0 : i32
    %c0_i32_0 = arith.constant 0 : i32
    %c0_i32_1 = arith.constant 0 : i32
    return %c0_i32, %c0_i32_0 : i32, i32
  }
  func.func @transform_3(%arg0: i32) -> (i32, i32) {
    %c0_i32 = arith.constant 0 : i32
    %c0_i32_0 = arith.constant 0 : i32
    %c0_i32_1 = arith.constant 0 : i32
    return %c0_i32, %c0_i32_0 : i32, i32
  }
  func.func @transform_4(%arg0: i32) -> (i32, i32) {
    %c0_i32 = arith.constant 0 : i32
    %c0_i32_0 = arith.constant 0 : i32
    %c0_i32_1 = arith.constant 0 : i32
    return %c0_i32, %c0_i32_0 : i32, i32
  }
  func.func @transform_5(%arg0: i32) -> (i32, i32) {
    %c0_i32 = arith.constant 0 : i32
    %c0_i32_0 = arith.constant 0 : i32
    return %arg0, %c0_i32 : i32, i32
  }
  func.func @transform_6(%arg0: i32) -> (i32, i32) {
    %c0_i32 = arith.constant 0 : i32
    %c0_i32_0 = arith.constant 0 : i32
    return %arg0, %c0_i32 : i32, i32
  }
  func.func @transform_7(%arg0: i32) -> (i32, i32) {
    %c0_i32 = arith.constant 0 : i32
    %c0_i32_0 = arith.constant 0 : i32
    return %arg0, %c0_i32 : i32, i32
  }
}

</mosaic_0001>

<bundles_post_ra>
// kernel: tpu_custom_call.1
= control target key start
LH: loop header
LB: loop body
LE: loop exit
PB: predicated region body
PF: predicated region fallthrough
CT: control target
= control target key end

     0   :  { %13 = vsyncpa [#allocation3], 0  ;;  %s506_s0 = inlined_call_operand.hbm [shape: f32[16,32], index: 0, kind: input, shape index: {}]   ;;  %s507_s1 = inlined_call_operand.vmem [shape: f32[1,32], index: 1, kind: input, shape index: {}]   ;;  %s508_s2 = inlined_call_operand.vmem [shape: f32[1,32], index: 2, kind: input, shape index: {}]   ;;  %s509_s3 = inlined_call_operand.hbm [shape: bf16[32,96], index: 3, kind: input, shape index: {}]   ;;  %s510_s4 = inlined_call_operand.vmem [shape: f32[1,96], index: 4, kind: input, shape index: {}]   ;;  %s511_s5 = inlined_call_operand.hbm [shape: bf16[16,32], index: 5, kind: output, shape index: {0}]   ;;  %s512_s6 = inlined_call_operand.hbm [shape: bf16[16,32], index: 6, kind: output, shape index: {1}]   ;;  %s513_s7 = inlined_call_operand.hbm [shape: bf16[16,32], index: 7, kind: output, shape index: {2}]  }
   0x1   :  { %14 = vsyncpa [#allocation6], 0 }
   0x2   :  { %15 = vsyncpa [#allocation4], 0 }
   0x3   :  { %16 = vsyncpa [#allocation9], 0  ;;  %s405_s24 = smov [#allocation2]  }
   0x4   :  { %s22_s25 = sshll.u32 %s405_s24, 4  ;;  %s23_s25 = int_to_ptr.vmem [resolvable:$true] %s22_s25 }
   0x5   :  { %s305_s26 = scalar_lea.vmem %s23_s25, 256  ;;  %p310_p1 = scmp.lt.s32.totalorder %s23_s25, %s23_s25 }
   0x6   :  { %p306_p0 = scmp.ne.s32.totalorder %s23_s25, %s305_s26  ;;  %p311_p2 = scmp.lt.s32.totalorder %s305_s26, %s305_s26 }
   0x8   :  { %p312_p3 = por %p311_p2, %p310_p1 }
   0xa   :  { %p313_p4 = pnand %p312_p3, %p306_p0 }
   0xc   :  { %316 = shalt.err (!%p313_p4)
}
   0xd   :  { %s406_s27 = smov 128   ;;  %s407_s28 = smov 8  }
   0xe   :  { %28 = dma.hbm_to_vmem [thread:$0]  %s506_s0, 256, %s23_s25, [#allocation3], %s406_s27, %s406_s27, %s407_s28  }
   0xf   :  { %s408_s8 = smov [#allocation5]  }
  0x10   :  { %s38_s9 = sshll.u32 %s408_s8, 4  ;;  %s39_s9 = int_to_ptr.vmem [resolvable:$true] %s38_s9 }
  0x11   :  { %s325_s10 = scalar_lea.vmem %s39_s9, 256  ;;  %p330_p6 = scmp.lt.s32.totalorder %s39_s9, %s39_s9 }
  0x12   :  { %p326_p5 = scmp.ne.s32.totalorder %s39_s9, %s325_s10  ;;  %p331_p7 = scmp.lt.s32.totalorder %s325_s10, %s325_s10 }
  0x14   :  { %p332_p8 = por %p331_p7, %p330_p6 }
  0x16   :  { %p333_p9 = pnand %p332_p8, %p326_p5 }
  0x18   :  { %336 = shalt.err (!%p333_p9)
}
  0x19   :  { %s409_s11 = smov 64   ;;  %s410_s12 = smov 4  }
  0x1a   :  { %44 = dma.hbm_to_vmem [thread:$0]  %s509_s3, 256, %s39_s9, [#allocation6], %s409_s11, %s409_s11, %s410_s12  }
  0x1b   :  { %397 = dma.done.wait [#allocation3], 256  }
  0x1c   :  { %398 = vsyncadd [#allocation3], 4294967040 }
  0x1d   :  { %399 = dma.done.wait [#allocation6], 256  }
  0x1e   :  { %400 = vsyncadd [#allocation6], 4294967040  ;;  %vm58_vm0 = vcmask 261120   ;;  %v54_v0 = vld [vmem:[#allocation2] sm:$0xff]  ;;  %v55_v1 = vld [vmem:[#allocation2 + $0x8] sm:$0xff]  ;;  %v411_v15 = vmov 0.0  }
  0x1f   :  { %v59_v2 = vsel %vm58_vm0, %v54_v0, 0.0  ;;  %v62_v3 = vsel %vm58_vm0, %v55_v1, 0.0  ;;  %v291_v14 = vld [vmem:[#allocation5 + $0x8] sm:$0xff]   ;;  %271 = vmatprep.subr.bf16.mxu0 %v411_v15  ;;  %vm412_vm1 = vmmov 0   ;;  %v292_v16 = vld [vmem:[#allocation5] sm:$0xff]   ;;  %vm180_vm2 = vcmask 257024  }
  0x20   :  { %60 = vadd.xlane.f32.xlu0 %v59_v2  ;;  %275 = vmatprep.mubr.msk.bf16.mxu0 %vm412_vm1, %v411_v15  ;;  %v254_v25 = vld [vmem:[%s507_s1] ss:$0 sm:$0xff]  ;;  %s413_s1 = smov 96  }
  0x21   :  { %272 = vmatpush3.bf16.msra.mxu0 %v291_v14  ;;  %v255_v29 = vld [vmem:[%s508_s2] ss:$0 sm:$0xff]  ;;  %s414_s2 = smov [#allocation7]  }
  0x22   :  { %273 = vmatprep.subr.bf16.mxu0 %v411_v15  ;;  %v256_v34 = vld [vmem:[%s510_s4] ss:$0 sm:$0xff]  ;;  %s210_s19 = sshll.u32 %s414_s2, 4  ;;  %s211_s19 = int_to_ptr.vmem [resolvable:$true] %s210_s19 }
  0x23   :  { %s337_s4 = scalar_lea.vmem %s211_s19, 128  ;;  %p342_p11 = scmp.lt.s32.totalorder %s211_s19, %s211_s19 }
  0x24   :  { %63 = vadd.xlane.f32.xlu0 %v62_v3  ;;  %p338_p10 = scmp.ne.s32.totalorder %s211_s19, %s337_s4  ;;  %p343_p12 = scmp.lt.s32.totalorder %s337_s4, %s337_s4 }
  0x25   :  { %274 = vmatpush3.bf16.msra.mxu0 %v292_v16 }
  0x26   :  { %p344_p13 = por %p343_p12, %p342_p11 }
  0x28   :  { %p345_p0 = pnand %p344_p13, %p338_p10 }
  0xa9   :  { %v61_v4 = vpop.xlane.xlu0 %60 }
  0xaa   :  { %v66_v5 = vmul.f32 0.03125, %v61_v4 }
  0xac   :  { %v68_v6 = vsub.f32 %v54_v0, %v66_v5 }
  0xad   :  { %v64_v7 = vpop.xlane.xlu0 %63 }
  0xae   :  { %v67_v8 = vmul.f32 0.03125, %v64_v7  ;;  %v70_v9 = vmul.f32 %v68_v6, %v68_v6 }
  0xb0   :  { %v69_v10 = vsub.f32 %v55_v1, %v67_v8  ;;  %v72_v11 = vsel %vm58_vm0, %v70_v9, 0.0 }
  0xb1   :  { %73 = vadd.xlane.f32.xlu1 %v72_v11 }
  0xb2   :  { %v71_v12 = vmul.f32 %v69_v10, %v69_v10 }
  0xb4   :  { %v75_v13 = vsel %vm58_vm0, %v71_v12, 0.0 }
  0xb5   :  { %76 = vadd.xlane.f32.xlu1 %v75_v13 }
 0x13a   :  { %v74_v17 = vpop.xlane.xlu1 %73 }
 0x13b   :  { %v78_v18 = vmul.f32 0.03125, %v74_v17 }
 0x13d   :  { %v80_v19 = vadd.f32 1e-05, %v78_v18 }
 0x13e   :  { %v77_v20 = vpop.xlane.xlu1 %76 }
 0x13f   :  { %293 = vrsqrt.f32 %v80_v19  ;;  %v79_v21 = vmul.f32 0.03125, %v77_v20 }
 0x141   :  { %v81_v22 = vadd.f32 1e-05, %v79_v21 }
 0x143   :  { %295 = vrsqrt.f32 %v81_v22 }
 0x14c   :  { %v294_v23 = vpop.eup %293 }
 0x14d   :  { %v84_v24 = vmul.f32 %v294_v23, %v68_v6 }
 0x14f   :  { %v92_v28 = vmul.f32 %v254_v25, %v84_v24 }
 0x150   :  { %v296_v26 = vpop.eup %295 }
 0x151   :  { %v85_v27 = vmul.f32 %v296_v26, %v69_v10  ;;  %v100_v31 = vadd.f32 %v255_v29, %v92_v28 }
 0x153   :  { %v93_v30 = vmul.f32 %v254_v25, %v85_v27 }
 0x155   :  { %v101_v32 = vadd.f32 %v255_v29, %v93_v30 }
 0x157   :  { %v102_v33 = vpack.c.bf16 %v101_v32, %v100_v31 }
 0x159   :  { %276 = vmatmul.mubr.msk.bf16.vlgmr.msra.gmra.mxu0 %vm58_vm0, %v102_v33 }
 0x219   :  { %v163_v35 = vpop.f32.mrf.mxu0 }
 0x21a   :  { %v164_v36 = vadd.f32 %v256_v34, %v163_v35 }
 0x21b   :  { %v277_v37 = vpop.f32.mrf.mxu0 }
 0x21c   :  { %v170_v38 = vmul.f32 0.35355338, %v164_v36  ;;  %v266_v39 = vpack.c.bf16 %v164_v36, %v164_v36 }
 0x21d   :  { %v166_v40 = vpop.f32.mrf.mxu0 }
 0x21e   :  { %v264_v41 = vpack.c.bf16 %v170_v38, %v170_v38  ;;  %v167_v42 = vadd.f32 %v256_v34, %v166_v40  ;;  %197 = vrot.lane.b32.xlu1 %v266_v39, %s409_s11  ;;  %189 = vrot.lane.b32.xlu0 %v266_v39, %s413_s1 }
 0x21f   :  { %v278_v43 = vpop.f32.mrf.mxu0 }
 0x220   :  { %v171_v44 = vmul.f32 0.35355338, %v167_v42  ;;  %v267_v45 = vpack.c.bf16 %v167_v42, %v167_v42  ;;  %181 = vst.msk [vmem:[#allocation7] sm:$0xf] %vm180_vm2, %v264_v41 }
 0x222   :  { %v265_v46 = vpack.c.bf16 %v171_v44, %v171_v44  ;;  %191 = vrot.lane.b32.xlu1 %v267_v45, %s413_s1 }
 0x224   :  { %182 = vst.msk [vmem:[#allocation7 + $0x4] sm:$0xf] %vm180_vm2, %v265_v46 }
 0x225   :  { %348 = shalt.err (!%p345_p0)
}
 0x226   :  { %216 = dma.vmem_to_hbm [thread:$0]  %s211_s19, 128, %s511_s5, [#allocation4], %s409_s11, %s409_s11, %s410_s12  }
 0x227   :  { %199 = vrot.lane.b32.xlu1 %v267_v45, %s409_s11  ;;  %s415_s22 = smov [#allocation8]   ;;  %s416_s24 = smov [#allocation10]  }
 0x228   :  { %s222_s23 = sshll.u32 %s415_s22, 4  ;;  %s234_s25 = sshll.u32 %s416_s24, 4  ;;  %s223_s23 = int_to_ptr.vmem [resolvable:$true] %s222_s23  ;;  %s235_s25 = int_to_ptr.vmem [resolvable:$true] %s234_s25 }
 0x229   :  { %s357_s26 = scalar_lea.vmem %s223_s23, 128  ;;  %p362_p2 = scmp.lt.s32.totalorder %s223_s23, %s223_s23 }
 0x22a   :  { %p358_p1 = scmp.ne.s32.totalorder %s223_s23, %s357_s26  ;;  %p363_p3 = scmp.lt.s32.totalorder %s357_s26, %s357_s26 }
 0x22c   :  { %p364_p4 = por %p363_p3, %p362_p2 }
 0x22e   :  { %p365_p5 = pnand %p364_p4, %p358_p1 }
 0x290   :  { %v198_v47 = vpop.permute.xlu1 %197  ;;  %v190_v48 = vpop.permute.xlu0 %189 }
 0x291   :  { %203 = vst.msk [vmem:[#allocation10] sm:$0xf] %vm180_vm2, %v198_v47  ;;  %195 = vst.msk [vmem:[#allocation8] sm:$0xf] %vm180_vm2, %v190_v48 }
 0x294   :  { %v192_v49 = vpop.permute.xlu1 %191 }
 0x295   :  { %196 = vst.msk [vmem:[#allocation8 + $0x4] sm:$0xf] %vm180_vm2, %v192_v49 }
 0x296   :  { %368 = shalt.err (!%p365_p5)
}
 0x297   :  { %228 = dma.vmem_to_hbm [thread:$0]  %s223_s23, 128, %s512_s6, [#allocation9], %s409_s11, %s409_s11, %s410_s12  }
 0x298   :  { %s377_s28 = scalar_lea.vmem %s235_s25, 128  ;;  %p382_p7 = scmp.lt.s32.totalorder %s235_s25, %s235_s25 }
 0x299   :  { %v200_v50 = vpop.permute.xlu1 %199  ;;  %p378_p6 = scmp.ne.s32.totalorder %s235_s25, %s377_s28  ;;  %p383_p8 = scmp.lt.s32.totalorder %s377_s28, %s377_s28 }
 0x29a   :  { %204 = vst.msk [vmem:[#allocation10 + $0x4] sm:$0xf] %vm180_vm2, %v200_v50 }
 0x29b   :  { %p384_p9 = por %p383_p8, %p382_p7 }
 0x29d   :  { %p385_p10 = pnand %p384_p9, %p378_p6 }
 0x29f   :  { %388 = shalt.err (!%p385_p10)
}
 0x2a0   :  { %240 = dma.vmem_to_hbm [thread:$0]  %s235_s25, 128, %s513_s7, [#allocation9], %s409_s11, %s409_s11, %s410_s12  }
 0x2a1   :  { %401 = dma.done.wait [#allocation4], 128  }
 0x2a2   :  { %402 = vsyncadd [#allocation4], 4294967168 }
 0x2a3   :  { %403 = dma.done.wait [#allocation9], 256  }
 0x2a4   :  { %404 = vsyncadd [#allocation9], 4294967040 }
 0x2a5   :  { %250 = vsyncpa [#allocation3], 1 }
 0x2a6   :  { %251 = vsyncpa [#allocation6], 1 }
 0x2a7   :  { %252 = vsyncpa [#allocation4], 1 }
 0x2a8   :  { %253 = vsyncpa [#allocation9], 1 }

</bundles_post_ra>
